<compile_context>
chip_gen: v7x
topology: tpu7x:2x2x1
jax: 0.10.0
libtpu: 0.0.40
codegen_flags: <defaults>
</compile_context>

<pallas_src>
import jax
import jax.numpy as jnp
from jax.experimental import pallas as pl
from jax.experimental.pallas import tpu as pltpu

LANES = 128


def opposing_aspects_kernel(g_ref, proto_ref, x_ref, o_ref):
    # g_ref     : SMEM (1,) f32 scalar-prefetch = -(relu(gamma) + 1e-6)
    # proto_ref : VMEM (2, 128) f32 lane-dense prototype rows
    #               row 0 (v_self): even lane -> V_raw[0], odd lane -> V_ripe[1]
    #               row 1 (v_part): even lane -> V_raw[1], odd lane -> V_ripe[0]
    # x_ref     : VMEM (TR, 128) lane-dense input  (even lane = x0, odd = x1)
    # o_ref     : VMEM (TR, 128) lane-dense output (even lane = a_raw, odd = a_ripe)
    neg_gamma = g_ref[0]
    proto = proto_ref[...]
    v_self = proto[0:1, :]            # (1, 128), broadcast along sublanes
    v_part = proto[1:2, :]

    x = x_ref[...]                    # (TR, 128) f32
    n_lanes = x.shape[-1]

    # Parity mask at (1, 128); broadcast into the select (cheap bookkeeping).
    parity = jax.lax.broadcasted_iota(jnp.int32, (1, n_lanes), 1) & 1
    is_even = parity == 0

    # Partner lane value = the other feature of the same point.  Pairs
    # (2k, 2k+1) never straddle a 128-lane row, so the rotate wrap-around is
    # never selected.  Rolls use the XLU slot (free next to VPU work).
    nxt = pltpu.roll(x, n_lanes - 1, 1)   # lane i <- lane i+1
    prv = pltpu.roll(x, 1, 1)             # lane i <- lane i-1
    partner = jnp.where(is_even, nxt, prv)

    d_self = x - v_self
    d_part = partner - v_part
    d2 = d_self * d_self + d_part * d_part        # squared distance
    o_ref[...] = jnp.exp(neg_gamma * d2)          # EUP exp


def opposing_aspects(x, v_raw, v_ripe, gamma, *, rows_per_tile=4096):
    """x: (N, 2) float32; v_raw, v_ripe: (2,); gamma: scalar. Returns (N, 2)."""
    N, D = x.shape
    assert D == 2

    x = jnp.asarray(x, jnp.float32)
    v_raw = jnp.asarray(v_raw, jnp.float32)
    v_ripe = jnp.asarray(v_ripe, jnp.float32)
    gamma = jnp.asarray(gamma, jnp.float32)

    total = N * 2
    rows = pl.cdiv(total, LANES)
    pad = rows * LANES - total

    # Tile rows: multiple of 8.  Default 4096 rows -> 2 MiB per buffer,
    # ~8 MiB in flight with in+out double-buffering (fits v5e scoped VMEM).
    rows_per_tile = max(8, (rows_per_tile // 8) * 8)
    rows_rounded = ((rows + 7) // 8) * 8
    tile_rows = min(rows_per_tile, rows_rounded)
    # Guarantee >= 2 grid steps whenever there is enough work, so the
    # "parallel" axis actually spans both TensorCores on v7x (megacore).
    if rows_rounded >= 16 and tile_rows >= rows_rounded:
        tile_rows = ((rows_rounded // 2 + 7) // 8) * 8
    n_tiles = pl.cdiv(rows, tile_rows)

    # Scalar prefetch: -(relu(gamma) + 1e-6), precomputed once in the wrapper.
    neg_gamma = jnp.reshape(-(jnp.maximum(gamma, 0.0) + 1e-6), (1,))

    # Lane-dense prototype rows (tiny replicated VMEM input).
    lane = jnp.arange(LANES)
    even = (lane % 2) == 0
    v_self_row = jnp.where(even, v_raw[0], v_ripe[1])
    v_part_row = jnp.where(even, v_raw[1], v_ripe[0])
    proto = jnp.stack([v_self_row, v_part_row]).astype(jnp.float32)   # (2, 128)

    # Lane-dense view of x: (N, 2) row-major -> (rows, 128).  Pad only to the
    # next 128-element boundary; aligned N (multiple of 64) is zero-copy.
    x_flat = jnp.reshape(x, (total,))
    if pad:
        x_flat = jnp.concatenate([x_flat, jnp.zeros((pad,), jnp.float32)])
    x2d = jnp.reshape(x_flat, (rows, LANES))

    out2d = pl.pallas_call(
        opposing_aspects_kernel,
        out_shape=jax.ShapeDtypeStruct((rows, LANES), jnp.float32),
        grid_spec=pltpu.PrefetchScalarGridSpec(
            num_scalar_prefetch=1,
            grid=(n_tiles,),
            in_specs=[
                pl.BlockSpec((2, LANES), lambda i, s: (0, 0)),           # proto rows
                pl.BlockSpec((tile_rows, LANES), lambda i, s: (i, 0)),   # x tile
            ],
            out_specs=pl.BlockSpec((tile_rows, LANES), lambda i, s: (i, 0)),
        ),
        compiler_params=pltpu.CompilerParams(
            dimension_semantics=("parallel",)),
        cost_estimate=pl.CostEstimate(
            flops=12 * N, transcendentals=2 * N, bytes_accessed=16 * N),
    )(neg_gamma, proto, x2d)

    out_flat = jnp.reshape(out2d, (rows * LANES,))
    if pad:
        out_flat = out_flat[:total]
    return jnp.reshape(out_flat, (N, 2))


def opposing_aspects_ref(x, v_raw, v_ripe, gamma):
    g = jnp.maximum(gamma, 0.0) + 1e-6
    d2_raw = jnp.sum((x - v_raw) ** 2, axis=-1, keepdims=True)
    d2_ripe = jnp.sum((x - v_ripe) ** 2, axis=-1, keepdims=True)
    return jnp.concatenate([jnp.exp(-g * d2_raw), jnp.exp(-g * d2_ripe)], axis=1)


if __name__ == "__main__":
    # Deterministic parameters, matching the module's __init__.
    v_raw = jnp.array([0.1, 0.1], dtype=jnp.float32)
    v_ripe = jnp.array([0.9, 0.9], dtype=jnp.float32)
    gamma = jnp.array(2.0, dtype=jnp.float32)

    # Small input consistent with the forward: batch of 16 points in R^2.
    x = jax.random.uniform(jax.random.PRNGKey(0), (16, 2), dtype=jnp.float32)
    out = jax.block_until_ready(opposing_aspects(x, v_raw, v_ripe, gamma))
    ref = opposing_aspects_ref(x, v_raw, v_ripe, gamma)
    assert out.shape == (16, 2)
    assert jnp.allclose(out, ref, atol=1e-5, rtol=1e-5)

    # Padding path (N not a multiple of 64) + multi-step "parallel" grid.
    x2 = jax.random.uniform(jax.random.PRNGKey(1), (1000, 2), dtype=jnp.float32)
    out2 = jax.block_until_ready(
        opposing_aspects(x2, v_raw, v_ripe, gamma, rows_per_tile=8))
    ref2 = opposing_aspects_ref(x2, v_raw, v_ripe, gamma)
    assert out2.shape == (1000, 2)
    assert jnp.allclose(out2, ref2, atol=1e-5, rtol=1e-5)

    # Zero-copy aligned path (1536 % 64 == 0) with an overhanging last block
    # (rows = 24, tile_rows = 16) exercising Pallas edge-block masking.
    x3 = jax.random.uniform(jax.random.PRNGKey(2), (1536, 2), dtype=jnp.float32)
    out3 = jax.block_until_ready(
        opposing_aspects(x3, v_raw, v_ripe, gamma, rows_per_tile=16))
    ref3 = opposing_aspects_ref(x3, v_raw, v_ripe, gamma)
    assert out3.shape == (1536, 2)
    assert jnp.allclose(out3, ref3, atol=1e-5, rtol=1e-5)

    print("KERNEL_OK")
</pallas_src>

<mosaic_0001>
module attributes {stable_mosaic.version = 11 : i64} {
  func.func @opposing_aspects_kernel(%arg0: i32, %arg1: memref<1xf32, #tpu.memory_space<smem>>, %arg2: memref<2x128xf32, #tpu.memory_space<vmem>>, %arg3: memref<8x128xf32, #tpu.memory_space<vmem>>, %arg4: memref<8x128xf32, #tpu.memory_space<vmem>>) attributes {dimension_semantics = [#tpu.dimension_semantics<parallel>], iteration_bounds = array<i64: 1>, scalar_prefetch = 1 : i64, scratch_operands = 0 : i64, tpu.core_type = #tpu.core_type<tc>, window_params = [{pipeline_mode = #tpu.pipeline_mode<synchronous>, transform_indices = @transform_0, window_bounds = array<i64: 2, 128>}, {transform_indices = @transform_1, window_bounds = array<i64: 8, 128>}, {transform_indices = @transform_2, window_bounds = array<i64: 8, 128>}]} {
    %c0 = arith.constant 0 : index
    %0 = memref.load %arg1[%c0] : memref<1xf32, #tpu.memory_space<smem>>
    %c0_0 = arith.constant 0 : index
    %c0_1 = arith.constant 0 : index
    %1 = vector.load %arg2[%c0_0, %c0_1] : memref<2x128xf32, #tpu.memory_space<vmem>>, vector<2x128xf32>
    %2 = vector.extract_strided_slice %1 {offsets = [0, 0], sizes = [1, 128], strides = [1, 1]} : vector<2x128xf32> to vector<1x128xf32>
    %3 = vector.extract_strided_slice %1 {offsets = [1, 0], sizes = [1, 128], strides = [1, 1]} : vector<2x128xf32> to vector<1x128xf32>
    %c0_2 = arith.constant 0 : index
    %c0_3 = arith.constant 0 : index
    %4 = vector.load %arg3[%c0_2, %c0_3] : memref<8x128xf32, #tpu.memory_space<vmem>>, vector<8x128xf32>
    %5 = tpu.iota {dimensions = array<i32: 1>} : vector<1x128xi32>
    %c1_i32 = arith.constant 1 : i32
    %6 = vector.broadcast %c1_i32 : i32 to vector<1x128xi32>
    %7 = arith.andi %5, %6 : vector<1x128xi32>
    %c0_i32 = arith.constant 0 : i32
    %8 = vector.broadcast %c0_i32 : i32 to vector<1x128xi32>
    %9 = arith.cmpi eq, %7, %8 : vector<1x128xi32>
    %c127_i32 = arith.constant 127 : i32
    %10 = tpu.dynamic_rotate %4 by %c127_i32 dim 1 : vector<8x128xf32>, i32 -> vector<8x128xf32>
    %c1_i32_4 = arith.constant 1 : i32
    %11 = tpu.dynamic_rotate %4 by %c1_i32_4 dim 1 : vector<8x128xf32>, i32 -> vector<8x128xf32>
    %12 = vector.shape_cast %9 : vector<1x128xi1> to vector<1x128xi1>
    %13 = vector.broadcast %12 : vector<1x128xi1> to vector<8x128xi1>
    %14 = arith.select %13, %10, %11 : vector<8x128xi1>, vector<8x128xf32>
    %15 = vector.broadcast %2 : vector<1x128xf32> to vector<8x128xf32>
    %16 = arith.subf %4, %15 : vector<8x128xf32>
    %17 = vector.broadcast %3 : vector<1x128xf32> to vector<8x128xf32>
    %18 = arith.subf %14, %17 : vector<8x128xf32>
    %19 = arith.mulf %16, %16 : vector<8x128xf32>
    %20 = arith.mulf %18, %18 : vector<8x128xf32>
    %21 = arith.addf %19, %20 : vector<8x128xf32>
    %22 = vector.broadcast %0 : f32 to vector<8x128xf32>
    %23 = arith.mulf %22, %21 : vector<8x128xf32>
    %24 = math.exp %23 : vector<8x128xf32>
    %c0_5 = arith.constant 0 : index
    %c0_6 = arith.constant 0 : index
    %25 = vector.load %arg4[%c0_5, %c0_6] : memref<8x128xf32, #tpu.memory_space<vmem>>, vector<8x128xf32>
    tpu.vector_store %arg4[%c0_5, %c0_6], %24 {strides = array<i32>} : memref<8x128xf32, #tpu.memory_space<vmem>>, vector<8x128xf32>,
    return
  }
  func.func @transform_0(%arg0: i32, %arg1: memref<1xf32, #tpu.memory_space<smem>>) -> (i32, i32) {
    %c0_i32 = arith.constant 0 : i32
    %c0_i32_0 = arith.constant 0 : i32
    %c0_i32_1 = arith.constant 0 : i32
    return %c0_i32, %c0_i32_0 : i32, i32
  }
  func.func @transform_1(%arg0: i32, %arg1: memref<1xf32, #tpu.memory_space<smem>>) -> (i32, i32) {
    %c0_i32 = arith.constant 0 : i32
    %c0_i32_0 = arith.constant 0 : i32
    return %arg0, %c0_i32 : i32, i32
  }
  func.func @transform_2(%arg0: i32, %arg1: memref<1xf32, #tpu.memory_space<smem>>) -> (i32, i32) {
    %c0_i32 = arith.constant 0 : i32
    %c0_i32_0 = arith.constant 0 : i32
    return %arg0, %c0_i32 : i32, i32
  }
}

</mosaic_0001>

<bundles_post_ra>
// kernel: tpu_custom_call.1
= control target key start
LH: loop header
LB: loop body
LE: loop exit
PB: predicated region body
PF: predicated region fallthrough
CT: control target
= control target key end

     0   :  { %s92_s14 = smov 127   ;;  %s139_s0 = inlined_call_operand.<no memory space> [shape: f32[1], index: 0, kind: input, shape index: {}]   ;;  %s140_s1 = inlined_call_operand.vmem [shape: f32[2,128], index: 1, kind: input, shape index: {}]   ;;  %s141_s2 = inlined_call_operand.vmem [shape: f32[1,128], index: 2, kind: input, shape index: {}]   ;;  %s142_s3 = inlined_call_operand.hbm [shape: f32[1,128], index: 3, kind: output, shape index: {}]  }
   0x1   :  { %v16_v0 = vld [vmem:[%s141_s2] sm:$0xff] }
   0x2   :  { %21 = vrot.lane.b32.xlu0 %v16_v0, %s92_s14 }
   0x3   :  { %9 = vsyncpa [#allocation5], 0  ;;  %s93_s15 = smov 1   ;;  %v17_v1 = vlaneseq  ;;  %v15_v5 = vld [vmem:[%s140_s1] sm:$0x3]  ;;  %v41_v17 = vstv %s139_s0 }
   0x5   :  { %v29_v2 = vshrl.u32 %v17_v1, 7  ;;  %v18_v4 = vand.u32 127, %v17_v1 }
   0x6   :  { %23 = vrot.lane.b32.xlu0 %v16_v0, %s93_s15 }
   0x7   :  { %v30_v3 = vsub.s32 0, %v29_v2  ;;  %v19_v7 = vand.u32 1, %v18_v4  ;;  %v35_v8 = vsub.s32 1, %v29_v2 }
   0x9   :  { %v31_v6 = vrot.slane %v15_v5, %v30_v3  ;;  %vm20_vm0 = vcmp.eq.s32.totalorder %v19_v7, 0  ;;  %v36_v11 = vrot.slane %v15_v5, %v35_v8 }
   0xb   :  { %v32_v10 = vsub.f32 %v16_v0, %v31_v6 }
   0xd   :  { %v38_v14 = vmul.f32 %v32_v10, %v32_v10 }
  0x74   :  { %v22_v9 = vpop.permute.xlu0 %21 }
  0x78   :  { %v24_v12 = vpop.permute.xlu0 %23 }
  0x79   :  { %v27_v13 = vsel %vm20_vm0, %v22_v9, %v24_v12 }
  0x7a   :  { %v37_v15 = vsub.f32 %v27_v13, %v36_v11 }
  0x7c   :  { %v39_v16 = vmul.f32 %v37_v15, %v37_v15 }
  0x7e   :  { %v40_v18 = vadd.f32 %v39_v16, %v38_v14 }
  0x80   :  { %v42_v19 = vmul.f32 %v41_v17, %v40_v18 }
  0x82   :  { %v43_v20 = vmul.f32 1.442695, %v42_v19 }
  0x84   :  { %66 = vpow2.f32 %v43_v20 }
  0x8e   :  { %v67_v21 = vpop.eup %66 }
  0x8f   :  { %45 = vst [vmem:[#allocation4] sm:$0xff] %v67_v21 }
  0x90   :  { %50 = vsyncadd [#allocation5], 112  ;;  %s94_s1 = smov [#allocation4]  }
  0x91   :  { %s51_s19 = sshll.u32 %s94_s1, 4  ;;  %s52_s19 = int_to_ptr.vmem [resolvable:$true] %s51_s19 }
  0x92   :  { %s68_s20 = scalar_lea.vmem %s52_s19, 16  ;;  %s72_s21 = scalar_lea.vmem %s52_s19, 128 }
  0x93   :  { %p69_p0 = scmp.ne.s32.totalorder %s52_s19, %s68_s20  ;;  %p73_p1 = scmp.lt.s32.totalorder %s52_s19, %s52_s19 }
  0x94   :  { %p74_p2 = scmp.lt.s32.totalorder %s72_s21, %s68_s20 }
  0x96   :  { %p75_p3 = por %p74_p2, %p73_p1 }
  0x98   :  { %p76_p4 = pnand %p75_p3, %p69_p0 }
  0x9a   :  { %79 = shalt.err (!%p76_p4)
}
  0x9b   :  { %s80_s23 = scalar_lea.hbm %s142_s3, 16 }
  0x9c   :  { %p81_p5 = scmp.ne.s32.totalorder %s142_s3, %s80_s23  ;;  %p84_p6 = scmp.lt.u32.totalorder %s80_s23, %s142_s3 }
  0x9e   :  { %p86_p7 = pnand %p84_p6, %p81_p5 }
  0xa0   :  { %89 = shalt.err (!%p86_p7)
}
  0xa1   :  { %s95_s28 = smov 16  }
  0xa2   :  { %57 = dma.vmem_to_hbm [thread:$0]  %s52_s19, 16, %s142_s3, [#allocation5], %s95_s28, %s95_s28, %s93_s15  }
  0xa3   :  { %90 = dma.done.wait [#allocation5], 128  }
  0xa4   :  { %91 = vsyncadd [#allocation5], 4294967168 }
  0xa5   :  { %61 = vsyncpa [#allocation5], 1 }

</bundles_post_ra>
